<compile_context>
chip_gen: v7x
topology: tpu7x:2x2x1
jax: 0.10.0
libtpu: 0.0.40
codegen_flags: <defaults>
</compile_context>

<pallas_src>
import math

import numpy as np
import jax
import jax.numpy as jnp
from jax.experimental import pallas as pl
from jax.experimental.pallas import tpu as pltpu

_LANE = 128
_SUBLANE = 8


def _cdiv(a, b):
    return -(-a // b)


def _round_up(n, m):
    return _cdiv(n, m) * m


def _gfp_kernel(x_ref, params_ref, out_ref):
    # x_ref:      (TILE_B, 1)    f32 -- time steps (column)
    # params_ref: (2, E_pad)     f32 -- row 0: tile(W, 2); row 1: phase (0 | pi/2)
    # out_ref:    (TILE_B, E_pad) out_dtype
    w = params_ref[0:1, :]        # (1, E_pad)
    phase = params_ref[1:2, :]    # (1, E_pad)
    # Same op order as the reference: ((x * W) * 2) * pi, then phase trick.
    z = x_ref[...] * w * 2.0 * math.pi
    out_ref[...] = jnp.sin(z + phase).astype(out_ref.dtype)


def prepare_gfp_params(W):
    """One-time preparation of the fixed parameter W.

    Returns params of shape (2, E_pad), E_pad = round_up(2H, 128):
      params[0] = [W, W, 0-pad]           (weights for both halves, unscaled)
      params[1] = [0]*H + [pi/2]*H + pad  (phase: sin half / cos half)
    """
    W = jnp.asarray(W, jnp.float32).reshape(-1)
    H = int(W.shape[0])
    E = 2 * H
    E_pad = _round_up(E, _LANE)

    params = jnp.zeros((2, E_pad), jnp.float32)
    params = params.at[0, :H].set(W).at[0, H:E].set(W)
    params = params.at[1, H:E].set(jnp.float32(math.pi / 2.0))
    return params


def _choose_tile_b(B, E_pad, out_itemsize):
    # ~4 MiB per output block (~8 MiB double-buffered): big enough to amortize
    # the ~0.35us per-grid-step overhead, small enough for v7x's 64 MiB VMEM.
    budget = 4 * 1024 * 1024
    tile = max(_SUBLANE, (budget // (E_pad * out_itemsize)) // _SUBLANE * _SUBLANE)
    # Ensure >= 2 grid steps for larger batches so v7x's 2nd TensorCore gets work.
    if B >= 2 * _SUBLANE:
        tile = min(tile, _round_up(_cdiv(B, 2), _SUBLANE))
    tile = min(tile, _round_up(B, _SUBLANE))
    return max(tile, _SUBLANE)


def gaussian_fourier_projection_apply(
    x, params, embed_dim, *, out_dtype=jnp.float32, force_pallas=False
):
    """x: (B,) f32, params: (2, E_pad) from prepare_gfp_params -> (B, embed_dim)."""
    x = jnp.asarray(x, jnp.float32).reshape(-1)
    B = int(x.shape[0])
    E_pad = int(params.shape[1])
    H = embed_dim // 2
    out_itemsize = jnp.dtype(out_dtype).itemsize

    # Small-problem fallback: below ~1 MiB of output the pallas_call launch /
    # DMA setup overhead dominates; plain XLA-fused elementwise is faster.
    if not force_pallas and B * E_pad * out_itemsize < (1 << 20):
        z = x[:, None] * params[0:1, :H] * 2.0 * math.pi
        return jnp.concatenate([jnp.sin(z), jnp.cos(z)], axis=-1).astype(out_dtype)

    tile_b = _choose_tile_b(B, E_pad, out_itemsize)
    grid = (_cdiv(B, tile_b),)  # ragged last block handled by Pallas

    cost = pl.CostEstimate(
        flops=15 * B * E_pad,                 # sin ~ range-reduce + poly on VPU
        transcendentals=B * E_pad,
        bytes_accessed=4 * (B + 2 * E_pad) + out_itemsize * B * E_pad,
    )

    out = pl.pallas_call(
        _gfp_kernel,
        out_shape=jax.ShapeDtypeStruct((B, E_pad), out_dtype),
        grid=grid,
        in_specs=[
            pl.BlockSpec((tile_b, 1), lambda i: (i, 0)),
            pl.BlockSpec((2, E_pad), lambda i: (0, 0)),
        ],
        out_specs=pl.BlockSpec((tile_b, E_pad), lambda i: (i, 0)),
        compiler_params=pltpu.CompilerParams(
            dimension_semantics=("parallel",),  # v7x: split batch across 2 TCs
        ),
        cost_estimate=cost,
    )(x[:, None], params)

    if E_pad == embed_dim:
        # Common lane-aligned case: no padding, no post-kernel slice copy.
        return out
    # Padding unavoidable; slice columns (XLA typically fuses this into the
    # consumer; consumers may also take the padded buffer directly).
    return out[:, :embed_dim]


def gaussian_fourier_projection(x, W, **kwargs):
    """Convenience wrapper: x: (B,), W: (H,) -> (B, 2*H)."""
    params = prepare_gfp_params(W)
    return gaussian_fourier_projection_apply(x, params, 2 * int(W.shape[0]), **kwargs)


def _reference(x, W):
    # Mirrors the PyTorch forward, same multiplication order.
    z = x[:, None] * W[None, :] * 2.0 * math.pi
    return jnp.concatenate([jnp.sin(z), jnp.cos(z)], axis=-1), z


def _check(out, x, W, name):
    ref, z = _reference(x, W)
    assert out.shape == ref.shape, (name, out.shape, ref.shape)
    # Argument-magnitude-aware tolerance: with scale=30 the sin argument reaches
    # several hundred radians, so the cos(z)==sin(z+pi/2) phase trick (and any
    # ulp-level argument rounding) produces output deltas of order |z|*eps.
    max_arg = float(jnp.max(jnp.abs(z)))
    atol = max(1e-3, 32.0 * float(np.finfo(np.float32).eps) * max_arg)
    np.testing.assert_allclose(np.asarray(out), np.asarray(ref), atol=atol, rtol=1e-3)


if __name__ == "__main__":
    scale = 30.0
    key = jax.random.PRNGKey(0)
    k1, k2, k3, k4 = jax.random.split(key, 4)

    # Case 1: lane-aligned embed_dim (no padding path), forced through Pallas.
    embed_dim_a, batch_a = 256, 64
    W_a = jax.random.normal(k1, (embed_dim_a // 2,), dtype=jnp.float32) * scale
    x_a = jax.random.uniform(k2, (batch_a,), dtype=jnp.float32)
    out_a = gaussian_fourier_projection(x_a, W_a, force_pallas=True)
    out_a = jax.block_until_ready(out_a)
    _check(out_a, x_a, W_a, "aligned")

    # Case 2: small, unaligned embed_dim (padded path), forced through Pallas.
    embed_dim_b, batch_b = 64, 8
    W_b = jax.random.normal(k3, (embed_dim_b // 2,), dtype=jnp.float32) * scale
    x_b = jax.random.uniform(k4, (batch_b,), dtype=jnp.float32)
    out_b = gaussian_fourier_projection(x_b, W_b, force_pallas=True)
    out_b = jax.block_until_ready(out_b)
    _check(out_b, x_b, W_b, "padded")

    # Case 3: auto dispatch on the tiny problem (takes the jnp fallback path).
    out_c = jax.block_until_ready(gaussian_fourier_projection(x_b, W_b))
    _check(out_c, x_b, W_b, "fallback")

    print("KERNEL_OK")
</pallas_src>

<mosaic_0001>
module attributes {stable_mosaic.version = 11 : i64} {
  func.func @_gfp_kernel(%arg0: i32, %arg1: memref<32x1xf32, #tpu.memory_space<vmem>>, %arg2: memref<2x256xf32, #tpu.memory_space<vmem>>, %arg3: memref<32x256xf32, #tpu.memory_space<vmem>>) attributes {dimension_semantics = [#tpu.dimension_semantics<parallel>], iteration_bounds = array<i64: 2>, scalar_prefetch = 0 : i64, scratch_operands = 0 : i64, tpu.core_type = #tpu.core_type<tc>, window_params = [{transform_indices = @transform_0, window_bounds = array<i64: 32, 1>}, {pipeline_mode = #tpu.pipeline_mode<synchronous>, transform_indices = @transform_1, window_bounds = array<i64: 2, 256>}, {transform_indices = @transform_2, window_bounds = array<i64: 32, 256>}]} {
    %c0 = arith.constant 0 : index
    %c0_0 = arith.constant 0 : index
    %0 = vector.load %arg2[%c0, %c0_0] : memref<2x256xf32, #tpu.memory_space<vmem>>, vector<1x256xf32>
    %c1 = arith.constant 1 : index
    %c0_1 = arith.constant 0 : index
    %1 = vector.load %arg2[%c1, %c0_1] : memref<2x256xf32, #tpu.memory_space<vmem>>, vector<1x256xf32>
    %c0_2 = arith.constant 0 : index
    %c0_3 = arith.constant 0 : index
    %2 = vector.load %arg1[%c0_2, %c0_3] : memref<32x1xf32, #tpu.memory_space<vmem>>, vector<32x1xf32>
    %3 = vector.broadcast %2 : vector<32x1xf32> to vector<32x256xf32>
    %4 = vector.broadcast %0 : vector<1x256xf32> to vector<32x256xf32>
    %5 = arith.mulf %3, %4 : vector<32x256xf32>
    %cst = arith.constant 2.000000e+00 : f32
    %6 = vector.broadcast %cst : f32 to vector<32x256xf32>
    %7 = arith.mulf %5, %6 : vector<32x256xf32>
    %cst_4 = arith.constant 3.14159274 : f32
    %8 = vector.broadcast %cst_4 : f32 to vector<32x256xf32>
    %9 = arith.mulf %7, %8 : vector<32x256xf32>
    %10 = vector.broadcast %1 : vector<1x256xf32> to vector<32x256xf32>
    %11 = arith.addf %9, %10 : vector<32x256xf32>
    %12 = math.sin %11 : vector<32x256xf32>
    %c0_5 = arith.constant 0 : index
    %c0_6 = arith.constant 0 : index
    %13 = vector.load %arg3[%c0_5, %c0_6] : memref<32x256xf32, #tpu.memory_space<vmem>>, vector<32x256xf32>
    tpu.vector_store %arg3[%c0_5, %c0_6], %12 {strides = array<i32>} : memref<32x256xf32, #tpu.memory_space<vmem>>, vector<32x256xf32>,
    return
  }
  func.func @transform_0(%arg0: i32) -> (i32, i32) {
    %c0_i32 = arith.constant 0 : i32
    %c0_i32_0 = arith.constant 0 : i32
    return %arg0, %c0_i32 : i32, i32
  }
  func.func @transform_1(%arg0: i32) -> (i32, i32) {
    %c0_i32 = arith.constant 0 : i32
    %c0_i32_0 = arith.constant 0 : i32
    %c0_i32_1 = arith.constant 0 : i32
    return %c0_i32, %c0_i32_0 : i32, i32
  }
  func.func @transform_2(%arg0: i32) -> (i32, i32) {
    %c0_i32 = arith.constant 0 : i32
    %c0_i32_0 = arith.constant 0 : i32
    return %arg0, %c0_i32 : i32, i32
  }
}

</mosaic_0001>

<bundles_post_ra>
// kernel: tpu_custom_call.1
= control target key start
LH: loop header
LB: loop body
LE: loop exit
PB: predicated region body
PF: predicated region fallthrough
CT: control target
= control target key end

     0   :  { %7 = vsyncpa [#allocation3], 0  ;;  %s2084_s0 = inlined_call_operand.vmem [shape: f32[64,1], index: 0, kind: input, shape index: {}]   ;;  %s2085_s1 = inlined_call_operand.vmem [shape: f32[2,256], index: 1, kind: input, shape index: {}]   ;;  %s2086_s2 = inlined_call_operand.hbm [shape: f32[64,256], index: 2, kind: output, shape index: {}]  }
   0x1   :  { %9 = vsyncpa [#allocation3 + $0x1], 0  ;;  %s1394_s9 = smov 0   ;;  %s1396_s10 = smov 0  }
   0x2   :  { %s1398_s11 = smov 0   ;;  %s1400_s12 = smov 0  }
   0x3 LB: > { %s1415_s13 = sadd.s32 4294967295, %s1367_s12   ;;  %s1143_s14 = sadd.s32 4294967294, %s1367_s12   ;;  %s1367_s12 = sphi %s1400_s12, %s2104_s12   ;;  %s1363_s11 = sphi %s1398_s11, %s2103_s11   ;;  %s1359_s10 = sphi %s1396_s10, %s2102_s10   ;;  %s1355_s9 = sphi %s1394_s9, %s2101_s9  }
   0x4   : > { %s1419_s15 = sadd.s32 1, %s1367_s12   ;;  %s69_s16 = sadd.s32 1, %s1363_s11 }
   0x5   : > { %s66_s17 = ssub.s32 %s1367_s12, %s1419_s15  ;;  %p79_p0 = scmp.ne.s32.totalorder %s1363_s11, %s1359_s10 }
   0x6   : > { %p67_p1 = scmp.eq.s32.totalorder %s66_s17, 0  ;;  %p80_p2 = scmp.eq.s32.totalorder %s1415_s13, 1 }
   0x7   : > { %p85_p3 = scmp.ne.s32.totalorder %s1359_s10, %s1355_s9  ;;  %p86_p4 = scmp.eq.s32.totalorder %s1143_s14, 1 }
   0x8   : > { %s1430_s18 = scalar_select %p67_p1, %s1363_s11, %s69_s16  }
   0x9   : > { %p1432_p5 = por %p80_p2, %p79_p0  ;;  %p1436_p6 = por %p86_p4, %p85_p3 }
   0xa   : > { %p1146_p7 = scmp.ge.s32.totalorder %s1367_s12, 1  ;;  %p116_p8 = scmp.lt.s32.totalorder %s1367_s12, 3 }
   0xc   : > { %p117_p9 = pnand %p1146_p7, %p116_p8 }
   0xd   : > { %s1148_s21 = sshll.u32 (!%p117_p9), %s1415_s13, 2  ;;  %v1369_v0 = vmov (!%p117_p9), 0   ;;  %v173_v5 = vlaneseq (!%p117_p9)  ;;  %v145_v9 = vld [vmem:[%s2085_s1] ss:$2 sm:$0x3] (!%p117_p9)  ;;  %s135_s30 = sand.u32 (!%p117_p9), 1, %s1359_s10  }
   0xe   : > { %120 = sbr.rel (%p117_p9) target bundleno = 412 (0x19c), region = 28  ;;  %1272 = vset.pattern.permute.xlu1 (!%p117_p9), %v1369_v0  ;;  %1271 = vset.pattern.permute.xlu0 (!%p117_p9), %v1369_v0  ;;  %p139_p10 = scmp.lt.s32.totalorder (!%p117_p9), %s1148_s21, 7  ;;  %v1150_v14 = vld [vmem:[%s2085_s1 + $0x1] ss:$2 sm:$0x3] (!%p117_p9) }
   0xf   : > { %v174_v6 = vshrl.u32 (!%p117_p9), %v173_v5, 7  ;;  %s1147_s3 = sshll.u32 (!%p117_p9), %s135_s30, 6  ;;  %s1190_s5 = sshll.u32 (!%p117_p9), %s1415_s13, 10 }
  0x10   : > { %s1748_s4 = scalar_lea.vmem (!%p117_p9), [#allocation2], %s1147_s3  ;;  %s2035_s14 = scalar_lea.hbm (!%p117_p9), %s2086_s2, %s1190_s5 }
  0x11   : > { %v175_v7 = vsub.s32 (!%p117_p9), 0, %v174_v6  ;;  %v179_v8 = vsub.s32 (!%p117_p9), 1, %v174_v6  ;;  %s1081_s6 = sshll.u32 (!%p117_p9), %s1748_s4, 4  ;;  %s2043_s13 = scalar_lea.sflag (!%p117_p9), [#allocation3], %s135_s30  ;;  %s2037_s6 = int_to_ptr.vmem [resolvable:$true] %s1081_s6 }
  0x12   : > { %s1305_s16 = scalar_lea.vmem (!%p117_p9), %s2037_s6, 1024  ;;  %s1376_s17 = smov (!%p117_p9), [#allocation2]  }
  0x13   : > { %v176_v10 = vrot.slane (!%p117_p9), %v145_v9, %v175_v7  ;;  %v180_v11 = vrot.slane (!%p117_p9), %v145_v9, %v179_v8  ;;  %v211_v25 = vrot.slane (!%p117_p9), %v1150_v14, %v175_v7  ;;  %v215_v29 = vrot.slane (!%p117_p9), %v1150_v14, %v179_v8  ;;  %p1306_p11 = scmp.ne.s32.totalorder (!%p117_p9), %s2037_s6, %s1305_s16 }
  0x15   : > { %s2106_s21 = smov (!%p139_p10, %s1148_s21), 7  ;;  %p1307_p12 = pnand %p1306_p11, %p1432_p5 }
  0x16   : > { %s1149_s22 = sshll.u32 %s2106_s21, 3  ;;  %s1309_s21 = sshll.u32 %s1376_s17, 4  ;;  %s1310_s21 = int_to_ptr.vmem [resolvable:$false] %s1309_s21 }
  0x17   : > { %s142_s25 = scalar_lea.vmem %s2084_s0, %s1149_s22  ;;  %p1308_p13 = pneg %p1307_p12 }
  0x18   : > { %v150_v1 = vld [vmem:[%s142_s25 + $0x10] sm:$0xff]  ;;  %v148_v2 = vld [vmem:[%s142_s25] sm:$0xff]  ;;  %v151_v3 = vld [vmem:[%s142_s25 + $0x18] sm:$0xff]  ;;  %s1311_s22 = scalar_lea.vmem %s1310_s21, 2048  ;;  %p1312_p0 = scmp.lt.s32.totalorder %s2037_s6, %s1310_s21 }
  0x19   : > { %164 = vperm.xlu1 %1272, %v150_v1   ;;  %154 = vperm.xlu0 %1271, %v148_v2   ;;  %v149_v4 = vld [vmem:[%s142_s25 + $0x8] sm:$0xff]  ;;  %p1313_p1 = scmp.lt.s32.totalorder %s1311_s22, %s1305_s16 }
  0x1b   : > { %p1314_p2 = por %p1313_p1, %p1312_p0 }
  0x1d   : > { %169 = vperm.xlu1 %1272, %v151_v3   ;;  %159 = vperm.xlu0 %1271, %v149_v4   ;;  %p1315_p3 = pnand %p1314_p2, %p1308_p13 }
  0x98   : > { %v165_v12 = vpop.permute.xlu1 %164  ;;  %v155_v13 = vpop.permute.xlu0 %154 }
  0x99   : > { %v183_v15 = vmul.f32 %v176_v10, %v155_v13  ;;  %v184_v16 = vmul.f32 %v180_v11, %v155_v13  ;;  %v187_v17 = vmul.f32 %v176_v10, %v165_v12  ;;  %v188_v18 = vmul.f32 %v180_v11, %v165_v12 }
  0x9b   : > { %v191_v19 = vmul.f32 2.0, %v183_v15  ;;  %v192_v20 = vmul.f32 2.0, %v184_v16  ;;  %v195_v21 = vmul.f32 2.0, %v187_v17  ;;  %v196_v24 = vmul.f32 2.0, %v188_v18 }
  0x9c   : > { %v170_v22 = vpop.permute.xlu1 %169  ;;  %v160_v23 = vpop.permute.xlu0 %159  ;;  %v1371_v15 = vmov 2475754826   ;;  %v1372_v17 = vmov 2131351028  }
  0x9d   : > { %v185_v26 = vmul.f32 %v176_v10, %v160_v23  ;;  %v189_v27 = vmul.f32 %v176_v10, %v170_v22  ;;  %v190_v28 = vmul.f32 %v180_v11, %v170_v22  ;;  %v199_v30 = vmul.f32 3.1415927, %v191_v19 }
  0x9e   : > { %v200_v31 = vmul.f32 3.1415927, %v192_v20  ;;  %v203_v32 = vmul.f32 3.1415927, %v195_v21  ;;  %v204_v36 = vmul.f32 3.1415927, %v196_v24  ;;  %v186_v42 = vmul.f32 %v180_v11, %v160_v23 }
  0x9f   : > { %v193_v33 = vmul.f32 2.0, %v185_v26  ;;  %v197_v34 = vmul.f32 2.0, %v189_v27  ;;  %v198_v35 = vmul.f32 2.0, %v190_v28  ;;  %v1452_v37 = vadd.f32 %v211_v25, %v199_v30 }
  0xa0   : > { %v1454_v38 = vadd.f32 %v211_v25, %v203_v32  ;;  %v1456_v41 = vadd.f32 %v215_v29, %v200_v31  ;;  %v1458_v44 = vadd.f32 %v215_v29, %v204_v36  ;;  %v194_v53 = vmul.f32 2.0, %v186_v42 }
  0xa1   : > { %v201_v39 = vmul.f32 3.1415927, %v193_v33  ;;  %v205_v40 = vmul.f32 3.1415927, %v197_v34  ;;  %v206_v43 = vmul.f32 3.1415927, %v198_v35 }
  0xa2   : > { %v226_v45 = vand.u32 2147483647, %v1452_v37  ;;  %v229_v47 = vand.u32 2139095040, %v1452_v37  ;;  %v330_v51 = vand.u32 2147483647, %v1456_v41  ;;  %v333_v52 = vand.u32 2139095040, %v1456_v41 }
  0xa3   : > { %v1461_v46 = vadd.f32 %v211_v25, %v205_v40  ;;  %v1464_v48 = vadd.f32 %v211_v25, %v201_v39  ;;  %v1466_v49 = vadd.f32 %v215_v29, %v206_v43  ;;  %v202_v61 = vmul.f32 3.1415927, %v194_v53 }
  0xa4   : > { %v230_v50 = vshrl.u32 %v229_v47, 23  ;;  %v233_v54 = vand.u32 8388607, %v226_v45  ;;  %v334_v56 = vshrl.u32 %v333_v52, 23  ;;  %v337_v57 = vand.u32 8388607, %v330_v51 }
  0xa5   : > { %v437_v58 = vand.u32 2139095040, %v1464_v48  ;;  %v1475_v6 = vadd.f32 %v215_v29, %v202_v61  ;;  %v434_v9 = vand.u32 2147483647, %v1464_v48  ;;  %v1370_v11 = vmov 683565275  }
  0xa6   : > { %v1151_v55 = vadd.s32 4294967169, %v230_v50  ;;  %v1155_v60 = vadd.s32 4294967169, %v334_v56  ;;  %v234_v62 = vor.u32 8388608, %v233_v54  ;;  %v338_v63 = vor.u32 8388608, %v337_v57 }
  0xa7   : > { %v438_v0 = vshrl.u32 %v437_v58, 23  ;;  %v1373_v19 = vmov 2102212464   ;;  %v1374_v21 = vmov 920167782   ;;  %vm228_vm14 = vcmp.lt.s32.totalorder %v1452_v37, 0 }
  0xa8   : > { %v236_v59 = vadd.s32 1, %v1151_v55  ;;  %v340_v1 = vadd.s32 1, %v1155_v60  ;;  %v1477_v7 = vshll.u32 %v234_v62, 8  ;;  %v1479_v8 = vshll.u32 %v338_v63, 8 }
  0xa9   : > { %v1159_v3 = vadd.s32 4294967169, %v438_v0  ;;  %v1375_v28 = vmov 1326507024   ;;  %vm1553_vm13 = vcmp.le.f32.partialorder %v226_v45, 0.7853982 }
  0xaa   : > { %vm237_vm0 = vcmp.gt.s32.totalorder %v236_v59, 0  ;;  %vm341_vm1 = vcmp.gt.s32.totalorder %v340_v1, 0 }
  0xab   : > { %v238_v2 = vsel %vm237_vm0, %v236_v59, 0  ;;  %v342_v13 = vsel %vm341_vm1, %v340_v1, 0  ;;  %v1483_v14 = vadd.s32 1, %v1159_v3 }
  0xac   : > { %v239_v4 = vshrl.u32 %v238_v2, 5  ;;  %v240_v5 = vand.u32 31, %v238_v2  ;;  %v344_v35 = vand.u32 31, %v342_v13  ;;  %v343_v56 = vshrl.u32 %v342_v13, 5 }
  0xad   : > { %vm445_vm6 = vcmp.gt.s32.totalorder %v1483_v14, 0 }
  0xae   : > { %v241_v10 = vsub.s32 32, %v240_v5  ;;  %v243_v12 = vshll.u32 %v1370_v11, %v240_v5  ;;  %v246_v16 = vshll.u32 %v1371_v15, %v240_v5  ;;  %v249_v18 = vshll.u32 %v1372_v17, %v240_v5 }
  0xaf   : > { %v252_v20 = vshll.u32 %v1373_v19, %v240_v5  ;;  %v255_v22 = vshll.u32 %v1374_v21, %v240_v5  ;;  %vm258_vm2 = vcmp.lt.s32.totalorder %v239_v4, 1  ;;  %vm259_vm3 = vcmp.lt.s32.totalorder %v239_v4, 2 }
  0xb0   : > { %v244_v23 = vshrl.u32 %v1371_v15, %v241_v10  ;;  %v247_v24 = vshrl.u32 %v1372_v17, %v241_v10  ;;  %v250_v25 = vshrl.u32 %v1373_v19, %v241_v10  ;;  %v242_v26 = vshrl.u32 %v1370_v11, %v241_v10 }
  0xb1   : > { %v253_v27 = vshrl.u32 %v1374_v21, %v241_v10  ;;  %v256_v29 = vshrl.u32 %v1375_v28, %v241_v10  ;;  %vm260_vm4 = vcmp.lt.s32.totalorder %v239_v4, 3  ;;  %vm261_vm5 = vcmp.lt.s32.totalorder %v239_v4, 4 }
  0xb2   : > { %v245_v30 = vor.u32 %v244_v23, %v243_v12  ;;  %v248_v31 = vor.u32 %v247_v24, %v246_v16  ;;  %v251_v32 = vor.u32 %v250_v25, %v249_v18  ;;  %v345_v52 = vsub.s32 32, %v344_v35 }
  0xb3   : > { %v254_v33 = vor.u32 %v253_v27, %v252_v20  ;;  %v257_v34 = vor.u32 %v256_v29, %v255_v22  ;;  %v347_v59 = vshll.u32 %v1370_v11, %v344_v35  ;;  %v350_v2 = vshll.u32 %v1371_v15, %v344_v35 }
  0xb4   : > { %v262_v36 = vsel %vm258_vm2, %v242_v26, %v245_v30  ;;  %v263_v39 = vsel %vm261_vm5, %v251_v32, 2102212464  ;;  %v266_v40 = vsel %vm258_vm2, %v245_v30, %v248_v31  ;;  %v270_v42 = vsel %vm258_vm2, %v248_v31, %v251_v32 }
  0xb5   : > { %v264_v43 = vsel %vm260_vm4, %v248_v31, %v263_v39  ;;  %v267_v47 = vsel %vm261_vm5, %v254_v33, 920167782  ;;  %v271_v50 = vsel %vm261_vm5, %v257_v34, 1326507024  ;;  %v348_v1 = vshrl.u32 %v1371_v15, %v345_v52 }
  0xb6   : > { %v265_v53 = vsel %vm259_vm3, %v262_v36, %v264_v43  ;;  %v268_v54 = vsel %vm260_vm4, %v251_v32, %v267_v47  ;;  %v272_v55 = vsel %vm260_vm4, %v254_v33, %v271_v50  ;;  %v351_v3 = vshrl.u32 %v1372_v17, %v345_v52 }
  0xb7   : > { %v269_v57 = vsel %vm259_vm3, %v266_v40, %v268_v54  ;;  %v273_v58 = vsel %vm259_vm3, %v270_v42, %v272_v55  ;;  %v281_v0 = vmul.u32 %v1477_v7, %v265_v53  ;;  %v353_v4 = vshll.u32 %v1372_v17, %v344_v35 }
  0xb8   : > { %v1504_v60 = vmul.u32.u64.low %v1477_v7, %v273_v58  ;;  %v1505_v61 = vmul.u32.u64.high %v1477_v7, %v273_v58, %v1504_v60  ;;  %v1508_v62 = vmul.u32.u64.low %v1477_v7, %v269_v57  ;;  %v1509_v63 = vmul.u32.u64.high %v1477_v7, %v269_v57, %v1508_v62 }
  0xb9   : > { %v354_v5 = vshrl.u32 %v1373_v19, %v345_v52  ;;  %v356_v10 = vshll.u32 %v1373_v19, %v344_v35  ;;  %v357_v12 = vshrl.u32 %v1374_v21, %v345_v52  ;;  %v349_v13 = vor.u32 %v348_v1, %v347_v59 }
  0xba   : > { %v352_v16 = vor.u32 %v351_v3, %v350_v2  ;;  %v359_v18 = vshll.u32 %v1374_v21, %v344_v35  ;;  %v360_v7 = vshrl.u32 %v1375_v28, %v345_v52  ;;  %vm283_vm7 = vc.u32 %v1505_v61, %v1508_v62 }
  0xbb   : > { %v284_v20 = vadd.s32 1, %v1509_v63  ;;  %v346_v22 = vshrl.u32 %v1370_v11, %v345_v52  ;;  %v355_v23 = vor.u32 %v354_v5, %v353_v4  ;;  %v358_v24 = vor.u32 %v357_v12, %v356_v10 }
  0xbc   : > { %v361_v25 = vor.u32 %v360_v7, %v359_v18  ;;  %vm362_vm8 = vcmp.lt.s32.totalorder %v343_v56, 1  ;;  %vm363_vm9 = vcmp.lt.s32.totalorder %v343_v56, 2  ;;  %vm364_vm10 = vcmp.lt.s32.totalorder %v343_v56, 3 }
  0xbd   : > { %v285_v26 = vsel %vm283_vm7, %v284_v20, %v1509_v63  ;;  %vm365_vm11 = vcmp.lt.s32.totalorder %v343_v56, 4  ;;  %v370_v27 = vsel %vm362_vm8, %v349_v13, %v352_v16  ;;  %v374_v32 = vsel %vm362_vm8, %v352_v16, %v355_v23 }
  0xbe   : > { %v286_v29 = vadd.s32 %v285_v26, %v281_v0  ;;  %v367_v30 = vsel %vm365_vm11, %v355_v23, 2102212464  ;;  %v371_v31 = vsel %vm365_vm11, %v358_v24, 920167782  ;;  %v366_v33 = vsel %vm362_vm8, %v346_v22, %v349_v13 }
  0xbf   : > { %v368_v34 = vsel %vm364_vm10, %v352_v16, %v367_v30  ;;  %v372_v35 = vsel %vm364_vm10, %v355_v23, %v371_v31  ;;  %v375_v36 = vsel %vm365_vm11, %v361_v25, 1326507024  ;;  %v446_v43 = vsel %vm445_vm6, %v1483_v14, 0 }
  0xc0   : > { %v287_v39 = vadd.s32 536870912, %v286_v29  ;;  %v373_v40 = vsel %vm363_vm9, %v370_v27, %v372_v35  ;;  %v376_v42 = vsel %vm364_vm10, %v358_v24, %v375_v36  ;;  %v441_v53 = vand.u32 8388607, %v434_v9 }
  0xc1   : > { %v377_v47 = vsel %vm363_vm9, %v374_v32, %v376_v42  ;;  %v1533_v50 = vmul.u32.u64.low %v1479_v8, %v373_v40  ;;  %v1534_v52 = vmul.u32.u64.high %v1479_v8, %v373_v40, %v1533_v50  ;;  %v369_v58 = vsel %vm363_vm9, %v366_v33, %v368_v34 }
  0xc2   : > { %v288_v54 = vshrl.u32 %v287_v39, 30  ;;  %v1540_v55 = vmul.u32.u64.low %v1479_v8, %v377_v47  ;;  %v1541_v57 = vmul.u32.u64.high %v1479_v8, %v377_v47, %v1540_v55  ;;  %v448_v59 = vand.u32 31, %v446_v43 }
  0xc3   : > { %v388_v14 = vadd.s32 1, %v1534_v52  ;;  %v442_v63 = vor.u32 8388608, %v441_v53  ;;  %v541_v1 = vand.u32 2139095040, %v1475_v6  ;;  %v385_v3 = vmul.u32 %v1479_v8, %v369_v58 }
  0xc4   : > { %v289_v60 = vshll.u32 %v288_v54, 30  ;;  %v449_v0 = vsub.s32 32, %v448_v59  ;;  %vm387_vm12 = vc.u32 %v1541_v57, %v1533_v50  ;;  %v538_v5 = vand.u32 2147483647, %v1475_v6 }
  0xc5   : > { %v389_v4 = vsel %vm387_vm12, %v388_v14, %v1534_v52  ;;  %v312_v12 = vsub.s32 4, %v288_v54  ;;  %v1562_v16 = vshrl.u32 %v446_v43, 5  ;;  %v1565_v45 = vshll.u32 %v442_v63, 8 }
  0xc6   : > { %v1546_v2 = vsub.s32 %v286_v29, %v289_v60  ;;  %v390_v13 = vadd.s32 %v389_v4, %v385_v3  ;;  %v452_v8 = vshrl.u32 %v1371_v15, %v449_v0  ;;  %v455_v18 = vshrl.u32 %v1372_v17, %v449_v0 }
  0xc7   : > { %v542_v7 = vshrl.u32 %v541_v1, 23  ;;  %v451_v23 = vshll.u32 %v1370_v11, %v448_v59  ;;  %v458_v24 = vshrl.u32 %v1373_v19, %v449_v0  ;;  %v454_v25 = vshll.u32 %v1371_v15, %v448_v59 }
  0xc8   : > { %v292_v10 = vsub.s32 0, %v1546_v2  ;;  %v391_v22 = vadd.s32 536870912, %v390_v13  ;;  %v460_v26 = vshll.u32 %v1373_v19, %v448_v59  ;;  %v461_v27 = vshrl.u32 %v1374_v21, %v449_v0 }
  0xc9   : > { %v464_v29 = vshrl.u32 %v1375_v28, %v449_v0  ;;  %v313_v31 = vsel %vm228_vm14, %v312_v12, %v288_v54  ;;  %v453_v32 = vor.u32 %v452_v8, %v451_v23  ;;  %v457_v33 = vshll.u32 %v1372_v17, %v448_v59 }
  0xca   : > { %v1152_v20 = vmin.u32 %v292_v10, %v1546_v2  ;;  %v1577_v34 = vshrl.u32 %v391_v22, 30  ;;  %v456_v35 = vor.u32 %v455_v18, %v454_v25  ;;  %v462_v36 = vor.u32 %v461_v27, %v460_v26 }
  0xcb   : > { %v463_v39 = vshll.u32 %v1374_v21, %v448_v59  ;;  %v282_v40 = vadd.s32 %v1508_v62, %v1505_v61  ;;  %v459_v43 = vor.u32 %v458_v24, %v457_v33  ;;  %vm469_vm15 = vcmp.lt.s32.totalorder %v1562_v16, 4 }
  0xcc   : > { %v294_v30 = vclz %v1152_v20  ;;  %v393_v47 = vshll.u32 %v1577_v34, 30  ;;  %v475_v53 = vsel %vm469_vm15, %v462_v36, 920167782  ;;  %v1163_v54 = vadd.s32 4294967169, %v542_v7 }
  0xcd   : > { %v465_v52 = vor.u32 %v464_v29, %v463_v39  ;;  %v315_v55 = vsel %vm1553_vm13, 0, %v313_v31  ;;  %vm466_vm1 = vcmp.lt.s32.totalorder %v1562_v16, 1  ;;  %vm467_vm2 = vcmp.lt.s32.totalorder %v1562_v16, 2 }
  0xce   : > { %v1153_v42 = vadd.s32 4294967294, %v294_v30  ;;  %v1590_v62 = vsub.s32 %v390_v13, %v393_v47  ;;  %vm468_vm3 = vcmp.lt.s32.totalorder %v1562_v16, 3  ;;  %v474_v58 = vsel %vm466_vm1, %v453_v32, %v456_v35 }
  0xcf   : > { %v476_v14 = vsel %vm468_vm3, %v459_v43, %v475_v53  ;;  %v478_v63 = vsel %vm466_vm1, %v456_v35, %v459_v43  ;;  %v450_v3 = vshrl.u32 %v1370_v11, %v449_v0  ;;  %v471_v4 = vsel %vm469_vm15, %v459_v43, 2102212464 }
  0xd0   : > { %vm1154_vm0 = vcmp.lt.s32.totalorder %v1153_v42, 0  ;;  %v396_v1 = vsub.s32 0, %v1590_v62  ;;  %v479_v10 = vsel %vm469_vm15, %v465_v52, 1326507024  ;;  %vm332_vm4 = vcmp.lt.s32.totalorder %v1456_v41, 0 }
  0xd1   : > { %v297_v61 = vsel %vm1154_vm0, 0, %v1153_v42  ;;  %v480_v18 = vsel %vm468_vm3, %v462_v36, %v479_v10  ;;  %v477_v0 = vsel %vm467_vm2, %v474_v58, %v476_v14  ;;  %v548_v22 = vadd.s32 1, %v1163_v54 }
  0xd2   : > { %v298_v59 = vsub.s32 32, %v297_v61  ;;  %v302_v60 = vsub.s32 4294967266, %v297_v61  ;;  %v299_v12 = vshll.u32 %v1546_v2, %v297_v61  ;;  %v1156_v7 = vmin.u32 %v396_v1, %v1590_v62 }
  0xd3   : > { %v481_v20 = vsel %vm467_vm2, %v478_v63, %v480_v18  ;;  %v470_v27 = vsel %vm466_vm1, %v450_v3, %v453_v32  ;;  %v472_v29 = vsel %vm468_vm3, %v456_v35, %v471_v4  ;;  %v1624_v30 = vand.u32 8388607, %v538_v5 }
  0xd4   : > { %v300_v13 = vshrl.u32 %v282_v40, %v298_v59  ;;  %v303_v8 = vadd.s32 127, %v302_v60  ;;  %v1615_v2 = vmul.u32.u64.low %v1565_v45, %v481_v20  ;;  %v1616_v25 = vmul.u32.u64.high %v1565_v45, %v481_v20, %v1615_v2 }
  0xd5   : > { %v398_v26 = vclz %v1156_v7  ;;  %vm1628_vm5 = vcmp.le.f32.partialorder %v330_v51, 0.7853982  ;;  %v1633_v36 = vmul.u32.u64.low %v1565_v45, %v477_v0  ;;  %v1634_v39 = vmul.u32.u64.high %v1565_v45, %v477_v0, %v1633_v36 }
  0xd6   : > { %v301_v23 = vor.u32 %v300_v13, %v299_v12  ;;  %v304_v24 = vshll.u32 %v303_v8, 23  ;;  %v319_v32 = vadd.s32 3, %v315_v55  ;;  %v416_v35 = vsub.s32 4, %v1577_v34 }
  0xd7   : > { %v1157_v40 = vadd.s32 4294967294, %v398_v26  ;;  %vm549_vm6 = vcmp.gt.s32.totalorder %v548_v22, 0  ;;  %v473_v47 = vsel %vm467_vm2, %v470_v27, %v472_v29  ;;  %vm491_vm8 = vc.u32 %v1616_v25, %v1633_v36 }
  0xd8   : > { %v305_v31 = vor.u32 4788187, %v304_v24  ;;  %v308_v43 = vcvt.s32.f32 %v301_v23  ;;  %v550_v52 = vsel %vm549_vm6, %v548_v22, 0  ;;  %v546_v51 = vor.u32 8388608, %v1624_v30 }
  0xd9   : > { %vm1158_vm7 = vcmp.lt.s32.totalorder %v1157_v40, 0  ;;  %v552_v53 = vand.u32 31, %v550_v52  ;;  %v386_v55 = vadd.s32 %v1533_v50, %v1541_v57  ;;  %v492_v58 = vadd.s32 1, %v1634_v39 }
  0xda   : > { %v306_v42 = vand.u32 2147483647, %v305_v31  ;;  %v401_v61 = vsel %vm1158_vm7, 0, %v1157_v40  ;;  %v417_v16 = vsel %vm332_vm4, %v416_v35, %v1577_v34  ;;  %v489_v14 = vmul.u32 %v1565_v45, %v473_v47 }
  0xdb   : > { %v402_v59 = vsub.s32 32, %v401_v61  ;;  %v406_v60 = vsub.s32 4294967266, %v401_v61  ;;  %v1650_v1 = vand.u32 3, %v319_v32  ;;  %v493_v3 = vsel %vm491_vm8, %v492_v58, %v1634_v39 }
  0xdc   : > { %v309_v54 = vmul.f32 %v308_v43, %v306_v42  ;;  %v553_v4 = vsub.s32 32, %v552_v53  ;;  %v403_v10 = vshll.u32 %v1590_v62, %v401_v61  ;;  %v494_v12 = vadd.s32 %v493_v3, %v489_v14 }
  0xdd   : > { %v404_v50 = vshrl.u32 %v386_v55, %v402_v59  ;;  %v407_v57 = vadd.s32 127, %v406_v60  ;;  %v419_v8 = vsel %vm1628_vm5, 0, %v417_v16  ;;  %v1658_v34 = vshrl.u32 %v550_v52, 5 }
  0xde   : > { %v310_v63 = vxor.u32 2147483648, %v309_v54  ;;  %v555_v45 = vshll.u32 %v1370_v11, %v552_v53  ;;  %v495_v62 = vadd.s32 536870912, %v494_v12  ;;  %v556_v20 = vshrl.u32 %v1371_v15, %v553_v4 }
  0xdf   : > { %v405_v7 = vor.u32 %v404_v50, %v403_v10  ;;  %v408_v0 = vshll.u32 %v407_v57, 23  ;;  %v558_v22 = vshll.u32 %v1371_v15, %v552_v53  ;;  %v559_v23 = vshrl.u32 %v1372_v17, %v553_v4 }
  0xe0   : > { %v311_v13 = vsel %vm228_vm14, %v310_v63, %v309_v54  ;;  %v1667_v2 = vshrl.u32 %v495_v62, 30  ;;  %v562_v26 = vshrl.u32 %v1373_v19, %v553_v4  ;;  %v561_v56 = vshll.u32 %v1372_v17, %v552_v53 }
  0xe1   : > { %v314_v18 = vsel %vm1553_vm13, %v1452_v37, %v311_v13  ;;  %v409_v24 = vor.u32 4788187, %v408_v0  ;;  %v412_v27 = vcvt.s32.f32 %v405_v7  ;;  %v564_v29 = vshll.u32 %v1373_v19, %v552_v53 }
  0xe2   : > { %1273 = vcosq.f32 %v314_v18  ;;  %v565_v30 = vshrl.u32 %v1374_v21, %v553_v4  ;;  %v497_v39 = vshll.u32 %v1667_v2, 30  ;;  %v567_v32 = vshll.u32 %v1374_v21, %v552_v53 }
  0xe3   : > { %1275 = vsinq.f32 %v314_v18  ;;  %v410_v31 = vand.u32 2147483647, %v409_v24  ;;  %v568_v40 = vshrl.u32 %v1375_v28, %v553_v4  ;;  %vm325_vm9 = vcmp.eq.s32.totalorder %v1650_v1, 2 }
  0xe4   : > { %v557_v35 = vor.u32 %v556_v20, %v555_v45  ;;  %v560_v42 = vor.u32 %v559_v23, %v558_v22  ;;  %v566_v43 = vor.u32 %v565_v30, %v564_v29  ;;  %vm322_vm10 = vcmp.eq.s32.totalorder %v1650_v1, 0 }
  0xe5   : > { %v413_v47 = vmul.f32 %v412_v27, %v410_v31  ;;  %v1678_v52 = vsub.s32 %v494_v12, %v497_v39  ;;  %v563_v54 = vor.u32 %v562_v26, %v561_v56  ;;  %v569_v55 = vor.u32 %v568_v40, %v567_v32 }
  0xe6   : > { %vm321_vm11 = vcmp.lt.s32.totalorder %v1650_v1, 2  ;;  %v423_v61 = vadd.s32 3, %v419_v8  ;;  %v554_v53 = vshrl.u32 %v1370_v11, %v553_v4  ;;  %v1682_v58 = vshll.u32 %v546_v51, 8 }
  0xe7   : > { %v645_v59 = vand.u32 2139095040, %v1454_v38  ;;  %vm318_vm12 = vweird.f32 %v1452_v37  ;;  %v414_v60 = vxor.u32 2147483648, %v413_v47  ;;  %v500_v16 = vsub.s32 0, %v1678_v52 }
  0xe8   : > { %v520_v14 = vsub.s32 4, %v1667_v2  ;;  %vm573_vm13 = vcmp.lt.s32.totalorder %v1658_v34, 4  ;;  %vm436_vm14 = vcmp.lt.s32.totalorder %v1464_v48, 0  ;;  %vm570_vm15 = vcmp.lt.s32.totalorder %v1658_v34, 1 }
  0xe9   : > { %vm572_vm0 = vcmp.lt.s32.totalorder %v1658_v34, 3  ;;  %v579_v51 = vsel %vm573_vm13, %v566_v43, 920167782  ;;  %v583_v63 = vsel %vm573_vm13, %v569_v55, 1326507024  ;;  %v415_v3 = vsel %vm332_vm4, %v414_v60, %v413_v47 }
  0xea   : > { %v1160_v4 = vmin.u32 %v500_v16, %v1678_v52  ;;  %v575_v10 = vsel %vm573_vm13, %v563_v54, 2102212464  ;;  %v578_v50 = vsel %vm570_vm15, %v557_v35, %v560_v42  ;;  %v418_v12 = vsel %vm1628_vm5, %v1456_v41, %v415_v3 }
  0xeb   : > { %v580_v13 = vsel %vm572_vm0, %v563_v54, %v579_v51  ;;  %v582_v8 = vsel %vm570_vm15, %v560_v42, %v563_v54  ;;  %v584_v45 = vsel %vm572_vm0, %v566_v43, %v583_v63  ;;  %1277 = vcosq.f32 %v418_v12 }
  0xec   : > { %v1274_v57 = vpop.eup %1273  ;;  %vm1711_vm1 = vcmp.le.f32.partialorder %v434_v9, 0.7853982  ;;  %v502_v33 = vclz %v1160_v4  ;;  %vm571_vm2 = vcmp.lt.s32.totalorder %v1658_v34, 2  ;;  %1279 = vsinq.f32 %v418_v12 }
  0xed   : > { %v1276_v18 = vpop.eup %1275  ;;  %v326_v7 = vxor.u32 2147483648, %v1274_v57  ;;  %v574_v20 = vsel %vm570_vm15, %v554_v53, %v557_v35  ;;  %v576_v22 = vsel %vm572_vm0, %v560_v42, %v575_v10  ;;  %v581_v9 = vsel %vm571_vm2, %v578_v50, %v580_v13 }
  0xee   : > { %v323_v62 = vxor.u32 2147483648, %v1276_v18  ;;  %v1161_v24 = vadd.s32 4294967294, %v502_v33  ;;  %v585_v26 = vsel %vm571_vm2, %v582_v8, %v584_v45  ;;  %v646_v30 = vshrl.u32 %v645_v59, 23 }
  0xef   : > { %v327_v23 = vsel %vm325_vm9, %v326_v7, %v1276_v18  ;;  %v1729_v56 = vmul.u32.u64.low %v1682_v58, %v585_v26  ;;  %v1730_v29 = vmul.u32.u64.high %v1682_v58, %v585_v26, %v1729_v56  ;;  %v490_v35 = vadd.s32 %v1633_v36, %v1616_v25 }
  0xf0   : > { %v324_v27 = vsel %vm322_vm10, %v1274_v57, %v323_v62  ;;  %vm1162_vm3 = vcmp.lt.s32.totalorder %v1161_v24, 0  ;;  %v1735_v39 = vmul.u32.u64.low %v1682_v58, %v581_v9  ;;  %v1736_v32 = vmul.u32.u64.high %v1682_v58, %v581_v9, %v1735_v39 }
  0xf1   : > { %v328_v31 = vsel %vm321_vm11, %v324_v27, %v327_v23  ;;  %v505_v42 = vsel %vm1162_vm3, 0, %v1161_v24  ;;  %v1167_v43 = vadd.s32 4294967169, %v646_v30  ;;  %v521_v1 = vsel %vm436_vm14, %v520_v14, %v1667_v2 }
  0xf2   : > { %v329_v40 = vsel %vm318_vm12, nan, %v328_v31  ;;  %v506_v47 = vsub.s32 32, %v505_v42  ;;  %v510_v54 = vsub.s32 4294967266, %v505_v42  ;;  %v577_v55 = vsel %vm571_vm2, %v574_v20, %v576_v22 }
  0xf3   : > { %1058 = vst [vmem:[%s1748_s4] sm:$0xff] %v329_v40  ;;  %v424_v37 = vand.u32 3, %v423_v61  ;;  %vm595_vm4 = vc.u32 %v1730_v29, %v1735_v39  ;;  %v642_v25 = vand.u32 2147483647, %v1454_v38  ;;  %v652_v36 = vadd.s32 1, %v1167_v43 }
  0xf4   : > { %v507_v53 = vshll.u32 %v1678_v52, %v505_v42  ;;  %v508_v59 = vshrl.u32 %v490_v35, %v506_v47  ;;  %v511_v60 = vadd.s32 127, %v510_v54  ;;  %v596_v2 = vadd.s32 1, %v1736_v32 }
  0xf5   : > { %vm422_vm5 = vweird.f32 %v1456_v41  ;;  %v523_v34 = vsel %vm1711_vm1, 0, %v521_v1  ;;  %v593_v16 = vmul.u32 %v1682_v58, %v577_v55  ;;  %vm653_vm6 = vcmp.gt.s32.totalorder %v652_v36, 0  ;;  %v1278_v61 = vpop.eup %1277 }
  0xf6   : > { %v509_v14 = vor.u32 %v508_v59, %v507_v53  ;;  %v512_v51 = vshll.u32 %v511_v60, 23  ;;  %v597_v63 = vsel %vm595_vm4, %v596_v2, %v1736_v32  ;;  %v654_v3 = vsel %vm653_vm6, %v652_v36, 0  ;;  %v1280_v4 = vpop.eup %1279 }
  0xf7   : > { %v430_v52 = vxor.u32 2147483648, %v1278_v61  ;;  %v598_v10 = vadd.s32 %v597_v63, %v593_v16  ;;  %v649_v50 = vand.u32 8388607, %v642_v25  ;;  %v656_v57 = vand.u32 31, %v654_v3 }
  0xf8   : > { %vm425_vm7 = vcmp.lt.s32.totalorder %v424_v37, 2  ;;  %v427_v12 = vxor.u32 2147483648, %v1280_v4  ;;  %vm429_vm8 = vcmp.eq.s32.totalorder %v424_v37, 2  ;;  %v513_v13 = vor.u32 4788187, %v512_v51 }
  0xf9   : > { %vm426_vm9 = vcmp.eq.s32.totalorder %v424_v37, 0  ;;  %v431_v58 = vsel %vm429_vm8, %v430_v52, %v1280_v4  ;;  %v599_v8 = vadd.s32 536870912, %v598_v10  ;;  %v657_v45 = vsub.s32 32, %v656_v57 }
  0xfa   : > { %v428_v18 = vsel %vm426_vm9, %v1278_v61, %v427_v12  ;;  %v514_v7 = vand.u32 2147483647, %v513_v13  ;;  %v516_v33 = vcvt.s32.f32 %v509_v14  ;;  %v527_v62 = vadd.s32 3, %v523_v34 }
  0xfb   : > { %v432_v20 = vsel %vm425_vm7, %v428_v18, %v431_v58  ;;  %vm540_vm10 = vcmp.lt.s32.totalorder %v1475_v6, 0  ;;  %v600_v22 = vshrl.u32 %v599_v8, 30  ;;  %v650_v23 = vor.u32 8388608, %v649_v50 }
  0xfc   : > { %v660_v24 = vshrl.u32 %v1371_v15, %v657_v45  ;;  %v433_v9 = vsel %vm422_vm5, nan, %v432_v20  ;;  %v517_v26 = vmul.f32 %v516_v33, %v514_v7  ;;  %v1767_v27 = vshrl.u32 %v654_v3, 5 }
  0xfd   : > { %v663_v56 = vshrl.u32 %v1372_v17, %v657_v45  ;;  %v601_v30 = vshll.u32 %v600_v22, 30  ;;  %v659_v31 = vshll.u32 %v1370_v11, %v656_v57  ;;  %v662_v32 = vshll.u32 %v1371_v15, %v656_v57  ;;  %1059 = vst [vmem:[%s1748_s4 + $0x8] sm:$0xff] %v433_v9 }
  0xfe   : > { %v666_v40 = vshrl.u32 %v1373_v19, %v657_v45  ;;  %v518_v35 = vxor.u32 2147483648, %v517_v26  ;;  %v665_v42 = vshll.u32 %v1372_v17, %v656_v57  ;;  %v668_v43 = vshll.u32 %v1373_v19, %v656_v57 }
  0xff   : > { %v669_v41 = vshrl.u32 %v1374_v21, %v657_v45  ;;  %v1777_v47 = vsub.s32 %v598_v10, %v601_v30  ;;  %v624_v54 = vsub.s32 4, %v600_v22  ;;  %v661_v1 = vor.u32 %v660_v24, %v659_v31 }
 0x100   : > { %v672_v55 = vshrl.u32 %v1375_v28, %v657_v45  ;;  %v519_v37 = vsel %vm436_vm14, %v518_v35, %v517_v26  ;;  %v664_v36 = vor.u32 %v663_v56, %v662_v32  ;;  %v671_v59 = vshll.u32 %v1374_v21, %v656_v57 }
 0x101   : > { %v670_v53 = vor.u32 %v669_v41, %v668_v43  ;;  %v522_v60 = vsel %vm1711_vm1, %v1464_v48, %v519_v37  ;;  %v1786_v2 = vand.u32 3, %v527_v62  ;;  %v604_v34 = vsub.s32 0, %v1777_v47 }
 0x102   : > { %v667_v16 = vor.u32 %v666_v40, %v665_v42  ;;  %1281 = vcosq.f32 %v522_v60  ;;  %v673_v61 = vor.u32 %v672_v55, %v671_v59  ;;  %v690_v14 = vshll.u32 %v650_v23, 8 }
 0x103   : > { %v749_v51 = vand.u32 2139095040, %v1458_v44  ;;  %1283 = vsinq.f32 %v522_v60  ;;  %vm1792_vm11 = vcmp.le.f32.partialorder %v538_v5, 0.7853982  ;;  %v1164_v0 = vmin.u32 %v604_v34, %v1777_v47 }
 0x104   : > { %vm674_vm12 = vcmp.lt.s32.totalorder %v1767_v27, 1  ;;  %vm677_vm13 = vcmp.lt.s32.totalorder %v1767_v27, 4  ;;  %v625_v3 = vsel %vm540_vm10, %v624_v54, %v600_v22  ;;  %v658_v4 = vshrl.u32 %v1370_v11, %v657_v45 }
 0x105   : > { %v682_v52 = vsel %vm674_vm12, %v661_v1, %v664_v36  ;;  %v683_v10 = vsel %vm677_vm13, %v670_v53, 920167782  ;;  %v606_v50 = vclz %v1164_v0  ;;  %vm676_vm14 = vcmp.lt.s32.totalorder %v1767_v27, 3 }
 0x106   : > { %v679_v5 = vsel %vm677_vm13, %v667_v16, 2102212464  ;;  %v686_v57 = vsel %vm674_vm12, %v664_v36, %v667_v16  ;;  %vm675_vm15 = vcmp.lt.s32.totalorder %v1767_v27, 2  ;;  %v684_v12 = vsel %vm676_vm14, %v667_v16, %v683_v10 }
 0x107   : > { %v687_v13 = vsel %vm677_vm13, %v673_v61, 1326507024  ;;  %v750_v58 = vshrl.u32 %v749_v51, 23  ;;  %v1165_v8 = vadd.s32 4294967294, %v606_v50  ;;  %v678_v18 = vsel %vm674_vm12, %v658_v4, %v661_v1 }
 0x108   : > { %v685_v7 = vsel %vm675_vm15, %v682_v52, %v684_v12  ;;  %v688_v33 = vsel %vm676_vm14, %v670_v53, %v687_v13  ;;  %v680_v62 = vsel %vm676_vm14, %v664_v36, %v679_v5  ;;  %vm529_vm1 = vcmp.lt.s32.totalorder %v1786_v2, 2 }
 0x109   : > { %v689_v45 = vsel %vm675_vm15, %v686_v57, %v688_v33  ;;  %v1808_v20 = vmul.u32.u64.low %v690_v14, %v685_v7  ;;  %v1809_v22 = vmul.u32.u64.high %v690_v14, %v685_v7, %v1808_v20  ;;  %vm1166_vm0 = vcmp.lt.s32.totalorder %v1165_v8, 0 }
 0x10a   : > { %v1812_v23 = vmul.u32.u64.low %v690_v14, %v689_v45  ;;  %v1813_v24 = vmul.u32.u64.high %v690_v14, %v689_v45, %v1812_v23  ;;  %v1171_v9 = vadd.s32 4294967169, %v750_v58  ;;  %vm530_vm2 = vcmp.eq.s32.totalorder %v1786_v2, 0 }
 0x10b   : > { %v594_v26 = vadd.s32 %v1735_v39, %v1730_v29  ;;  %v609_v56 = vsel %vm1166_vm0, 0, %v1165_v8  ;;  %v681_v32 = vsel %vm675_vm15, %v678_v18, %v680_v62  ;;  %vm533_vm3 = vcmp.eq.s32.totalorder %v1786_v2, 2 }
 0x10c   : > { %v610_v30 = vsub.s32 32, %v609_v56  ;;  %v614_v31 = vsub.s32 4294967266, %v609_v56  ;;  %v756_v40 = vadd.s32 1, %v1171_v9  ;;  %v1282_v35 = vpop.eup %1281  ;;  %v627_v42 = vsel %vm1792_vm11, 0, %v625_v3 }
 0x10d   : > { %v700_v43 = vadd.s32 1, %v1809_v22  ;;  %v746_v41 = vand.u32 2147483647, %v1458_v44  ;;  %v1284_v54 = vpop.eup %1283  ;;  %v534_v1 = vxor.u32 2147483648, %v1282_v35  ;;  %v611_v29 = vshll.u32 %v1777_v47, %v609_v56 }
 0x10e   : > { %v612_v39 = vshrl.u32 %v594_v26, %v610_v30  ;;  %v615_v55 = vadd.s32 127, %v614_v31  ;;  %v531_v37 = vxor.u32 2147483648, %v1284_v54  ;;  %v697_v27 = vmul.u32 %v690_v14, %v681_v32 }
 0x10f   : > { %vm699_vm4 = vc.u32 %v1813_v24, %v1808_v20  ;;  %vm757_vm5 = vcmp.gt.s32.totalorder %v756_v40, 0  ;;  %v535_v36 = vsel %vm533_vm3, %v534_v1, %v1284_v54  ;;  %v631_v16 = vadd.s32 3, %v627_v42 }
 0x110   : > { %v613_v53 = vor.u32 %v612_v39, %v611_v29  ;;  %v616_v59 = vshll.u32 %v615_v55, 23  ;;  %v701_v60 = vsel %vm699_vm4, %v700_v43, %v1809_v22  ;;  %v532_v34 = vsel %vm530_vm2, %v1282_v35, %v531_v37 }
 0x111   : > { %v702_v61 = vadd.s32 %v701_v60, %v697_v27  ;;  %v758_v47 = vsel %vm757_vm5, %v756_v40, 0  ;;  %vm526_vm6 = vweird.f32 %v1464_v48  ;;  %v536_v14 = vsel %vm529_vm1, %v532_v34, %v535_v36 }
 0x112   : > { %v617_v51 = vor.u32 4788187, %v616_v59  ;;  %v753_v0 = vand.u32 8388607, %v746_v41  ;;  %v537_v3 = vsel %vm526_vm6, nan, %v536_v14  ;;  %v760_v52 = vand.u32 31, %v758_v47 }
 0x113   : > { %v703_v4 = vadd.s32 536870912, %v702_v61  ;;  %v620_v50 = vcvt.s32.f32 %v613_v53  ;;  %1060 = vst [vmem:[%s1748_s4 + $0x10] sm:$0xff] %v537_v3  ;;  %v1838_v5 = vand.u32 3, %v631_v16  ;;  %v759_v58 = vshrl.u32 %v758_v47, 5 }
 0x114   : > { %v618_v10 = vand.u32 2147483647, %v617_v51  ;;  %v761_v12 = vsub.s32 32, %v760_v52  ;;  %v754_v48 = vor.u32 8388608, %v753_v0  ;;  %v853_v2 = vand.u32 2139095040, %v1461_v46 }
 0x115   : > { %v1840_v57 = vshrl.u32 %v703_v4, 30  ;;  %v763_v18 = vshll.u32 %v1370_v11, %v760_v52  ;;  %v766_v33 = vshll.u32 %v1371_v15, %v760_v52  ;;  %v769_v26 = vshll.u32 %v1372_v17, %v760_v52 }
 0x116   : > { %v621_v13 = vmul.f32 %v620_v50, %v618_v10  ;;  %v764_v7 = vshrl.u32 %v1371_v15, %v761_v12  ;;  %v767_v45 = vshrl.u32 %v1372_v17, %v761_v12  ;;  %v770_v22 = vshrl.u32 %v1373_v19, %v761_v12 }
 0x117   : > { %v705_v8 = vshll.u32 %v1840_v57, 30  ;;  %v773_v23 = vshrl.u32 %v1374_v21, %v761_v12  ;;  %v772_v56 = vshll.u32 %v1373_v19, %v760_v52  ;;  %v776_v30 = vshrl.u32 %v1375_v28, %v761_v12 }
 0x118   : > { %v622_v62 = vxor.u32 2147483648, %v621_v13  ;;  %v765_v32 = vor.u32 %v764_v7, %v763_v18  ;;  %v768_v40 = vor.u32 %v767_v45, %v766_v33  ;;  %v775_v35 = vshll.u32 %v1374_v21, %v760_v52 }
 0x119   : > { %v1850_v9 = vsub.s32 %v702_v61, %v705_v8  ;;  %v771_v54 = vor.u32 %v770_v22, %v769_v26  ;;  %v774_v1 = vor.u32 %v773_v23, %v772_v56  ;;  %v794_v39 = vshll.u32 %v754_v48, 8 }
 0x11a   : > { %v623_v31 = vsel %vm540_vm10, %v622_v62, %v621_v13  ;;  %v777_v29 = vor.u32 %v776_v30, %v775_v35  ;;  %v854_v55 = vshrl.u32 %v853_v2, 23  ;;  %vm644_vm7 = vcmp.lt.s32.totalorder %v1454_v38, 0 }
 0x11b   : > { %v626_v42 = vsel %vm1792_vm11, %v1475_v6, %v623_v31  ;;  %v708_v43 = vsub.s32 0, %v1850_v9  ;;  %vm778_vm8 = vcmp.lt.s32.totalorder %v759_v58, 1  ;;  %vm781_vm9 = vcmp.lt.s32.totalorder %v759_v58, 4 }
 0x11c   : > { %1285 = vcosq.f32 %v626_v42  ;;  %vm779_vm10 = vcmp.lt.s32.totalorder %v759_v58, 2  ;;  %vm780_vm12 = vcmp.lt.s32.totalorder %v759_v58, 3  ;;  %v786_v27 = vsel %vm778_vm8, %v765_v32, %v768_v40 }
 0x11d   : > { %1287 = vsinq.f32 %v626_v42  ;;  %v1168_v37 = vmin.u32 %v708_v43, %v1850_v9  ;;  %v787_v63 = vsel %vm781_vm9, %v774_v1, 920167782  ;;  %v762_v53 = vshrl.u32 %v1370_v11, %v761_v12 }
 0x11e   : > { %v783_v59 = vsel %vm781_vm9, %v771_v54, 2102212464  ;;  %v790_v60 = vsel %vm778_vm8, %v768_v40, %v771_v54  ;;  %v728_v34 = vsub.s32 4, %v1840_v57  ;;  %v788_v16 = vsel %vm780_vm12, %v771_v54, %v787_v63 }
 0x11f   : > { %v710_v36 = vclz %v1168_v37  ;;  %v791_v61 = vsel %vm781_vm9, %v777_v29, 1326507024  ;;  %v1175_v47 = vadd.s32 4294967169, %v854_v55  ;;  %v782_v51 = vsel %vm778_vm8, %v762_v53, %v765_v32 }
 0x120   : > { %v789_v0 = vsel %vm779_vm10, %v786_v27, %v788_v16  ;;  %v792_v3 = vsel %vm780_vm12, %v774_v1, %v791_v61  ;;  %v784_v4 = vsel %vm780_vm12, %v768_v40, %v783_v59  ;;  %vm634_vm13 = vcmp.eq.s32.totalorder %v1838_v5, 0 }
 0x121   : > { %v1169_v14 = vadd.s32 4294967294, %v710_v36  ;;  %v793_v52 = vsel %vm779_vm10, %v790_v60, %v792_v3  ;;  %v1868_v10 = vmul.u32.u64.low %v794_v39, %v789_v0  ;;  %v1869_v50 = vmul.u32.u64.high %v794_v39, %v789_v0, %v1868_v10 }
 0x122   : > { %v1872_v12 = vmul.u32.u64.low %v794_v39, %v793_v52  ;;  %v1873_v13 = vmul.u32.u64.high %v794_v39, %v793_v52, %v1872_v12  ;;  %v860_v48 = vadd.s32 1, %v1175_v47  ;;  %vm637_vm14 = vcmp.eq.s32.totalorder %v1838_v5, 2 }
 0x123   : > { %vm1170_vm11 = vcmp.lt.s32.totalorder %v1169_v14, 0  ;;  %v698_v2 = vadd.s32 %v1808_v20, %v1813_v24  ;;  %v785_v33 = vsel %vm779_vm10, %v782_v51, %v784_v4  ;;  %v729_v45 = vsel %vm644_vm7, %v728_v34, %v1840_v57 }
 0x124   : > { %v713_v8 = vsel %vm1170_vm11, 0, %v1169_v14  ;;  %vm861_vm15 = vcmp.gt.s32.totalorder %v860_v48, 0  ;;  %v804_v22 = vadd.s32 1, %v1869_v50  ;;  %v850_v23 = vand.u32 2147483647, %v1461_v46 }
 0x125   : > { %v714_v18 = vsub.s32 32, %v713_v8  ;;  %v718_v7 = vsub.s32 4294967266, %v713_v8  ;;  %v862_v26 = vsel %vm861_vm15, %v860_v48, 0  ;;  %v715_v20 = vshll.u32 %v1850_v9, %v713_v8 }
 0x126   : > { %v1286_v62 = vpop.eup %1285  ;;  %v801_v58 = vmul.u32 %v794_v39, %v785_v33  ;;  %vm803_vm0 = vc.u32 %v1873_v13, %v1868_v10  ;;  %v864_v40 = vand.u32 31, %v862_v26  ;;  %vm633_vm1 = vcmp.lt.s32.totalorder %v1838_v5, 2 }
 0x127   : > { %v1288_v56 = vpop.eup %1287  ;;  %v638_v30 = vxor.u32 2147483648, %v1286_v62  ;;  %v716_v24 = vshrl.u32 %v698_v2, %v714_v18  ;;  %v719_v31 = vadd.s32 127, %v718_v7  ;;  %v805_v43 = vsel %vm803_vm0, %v804_v22, %v1869_v50 }
 0x128   : > { %v635_v32 = vxor.u32 2147483648, %v1288_v56  ;;  %v806_v54 = vadd.s32 %v805_v43, %v801_v58  ;;  %v865_v1 = vsub.s32 32, %v864_v40  ;;  %vm630_vm2 = vweird.f32 %v1475_v6 }
 0x129   : > { %v639_v57 = vsel %vm637_vm14, %v638_v30, %v1288_v56  ;;  %v717_v35 = vor.u32 %v716_v24, %v715_v20  ;;  %v720_v42 = vshll.u32 %v719_v31, 23  ;;  %vm1897_vm3 = vcmp.le.f32.partialorder %v642_v25, 0.7853982 }
 0x12a   : > { %v636_v9 = vsel %vm634_vm13, %v1286_v62, %v635_v32  ;;  %v731_v27 = vsel %vm1897_vm3, 0, %v729_v45  ;;  %v807_v63 = vadd.s32 536870912, %v806_v54  ;;  %v868_v5 = vshrl.u32 %v1371_v15, %v865_v1 }
 0x12b   : > { %v640_v29 = vsel %vm633_vm1, %v636_v9, %v639_v57  ;;  %v721_v55 = vor.u32 4788187, %v720_v42  ;;  %v724_v53 = vcvt.s32.f32 %v717_v35  ;;  %v857_v6 = vand.u32 8388607, %v850_v23 }
 0x12c   : > { %v641_v37 = vsel %vm630_vm2, nan, %v640_v29  ;;  %v871_v59 = vshrl.u32 %v1372_v17, %v865_v1  ;;  %v1908_v25 = vshrl.u32 %v807_v63, 30  ;;  %v867_v60 = vshll.u32 %v1370_v11, %v864_v40 }
 0x12d   : > { %v722_v36 = vand.u32 2147483647, %v721_v55  ;;  %1061 = vst [vmem:[%s1748_s4 + $0x18] sm:$0xff] %v641_v37  ;;  %v874_v34 = vshrl.u32 %v1373_v19, %v865_v1  ;;  %v877_v16 = vshrl.u32 %v1374_v21, %v865_v1  ;;  %v863_v47 = vshrl.u32 %v862_v26, 5 }
 0x12e   : > { %v870_v14 = vshll.u32 %v1371_v15, %v864_v40  ;;  %v876_v51 = vshll.u32 %v1373_v19, %v864_v40  ;;  %v809_v0 = vshll.u32 %v1908_v25, 30  ;;  %v869_v3 = vor.u32 %v868_v5, %v867_v60 }
 0x12f   : > { %v725_v61 = vmul.f32 %v724_v53, %v722_v36  ;;  %v873_v4 = vshll.u32 %v1372_v17, %v864_v40  ;;  %v880_v52 = vshrl.u32 %v1375_v28, %v865_v1  ;;  %v879_v2 = vshll.u32 %v1374_v21, %v864_v40 }
 0x130   : > { %v872_v12 = vor.u32 %v871_v59, %v870_v14  ;;  %v878_v48 = vor.u32 %v877_v16, %v876_v51  ;;  %v735_v8 = vadd.s32 3, %v731_v27  ;;  %v1919_v18 = vsub.s32 %v806_v54, %v809_v0 }
 0x131   : > { %v726_v50 = vxor.u32 2147483648, %v725_v61  ;;  %v858_v7 = vor.u32 8388608, %v857_v6  ;;  %v875_v33 = vor.u32 %v874_v34, %v873_v4  ;;  %v866_v45 = vshrl.u32 %v1370_v11, %v865_v1 }
 0x132   : > { %v881_v22 = vor.u32 %v880_v52, %v879_v2  ;;  %vm882_vm4 = vcmp.lt.s32.totalorder %v863_v47, 1  ;;  %v812_v56 = vsub.s32 0, %v1919_v18  ;;  %vm883_vm5 = vcmp.lt.s32.totalorder %v863_v47, 2 }
 0x133   : > { %v727_v62 = vsel %vm644_vm7, %v726_v50, %v725_v61  ;;  %vm885_vm6 = vcmp.lt.s32.totalorder %v863_v47, 4  ;;  %vm884_vm8 = vcmp.lt.s32.totalorder %v863_v47, 3  ;;  %v890_v30 = vsel %vm882_vm4, %v869_v3, %v872_v12 }
 0x134   : > { %v730_v26 = vsel %vm1897_vm3, %v1454_v38, %v727_v62  ;;  %v891_v20 = vsel %vm885_vm6, %v878_v48, 920167782  ;;  %v1172_v24 = vmin.u32 %v812_v56, %v1919_v18  ;;  %v887_v31 = vsel %vm885_vm6, %v875_v33, 2102212464 }
 0x135   : > { %1289 = vcosq.f32 %v730_v26  ;;  %v892_v32 = vsel %vm884_vm8, %v875_v33, %v891_v20  ;;  %v894_v40 = vsel %vm882_vm4, %v872_v12, %v875_v33  ;;  %v895_v57 = vsel %vm885_vm6, %v881_v22, 1326507024 }
 0x136   : > { %1291 = vsinq.f32 %v730_v26  ;;  %v893_v58 = vsel %vm883_vm5, %v890_v30, %v892_v32  ;;  %v898_v35 = vshll.u32 %v858_v7, 8  ;;  %v736_v42 = vand.u32 3, %v735_v8 }
 0x137   : > { %v814_v43 = vclz %v1172_v24  ;;  %v886_v9 = vsel %vm882_vm4, %v866_v45, %v869_v3  ;;  %v888_v54 = vsel %vm884_vm8, %v872_v12, %v887_v31  ;;  %v896_v1 = vsel %vm884_vm8, %v878_v48, %v895_v57 }
 0x138   : > { %v1933_v29 = vmul.u32.u64.low %v898_v35, %v893_v58  ;;  %v1934_v39 = vmul.u32.u64.high %v898_v35, %v893_v58, %v1933_v29  ;;  %v897_v37 = vsel %vm883_vm5, %v894_v40, %v896_v1  ;;  %v957_v27 = vand.u32 2139095040, %v1466_v49 }
 0x139   : > { %v1173_v55 = vadd.s32 4294967294, %v814_v43  ;;  %v1939_v63 = vmul.u32.u64.low %v898_v35, %v897_v37  ;;  %v1940_v5 = vmul.u32.u64.high %v898_v35, %v897_v37, %v1939_v63  ;;  %vm734_vm7 = vweird.f32 %v1454_v38 }
 0x13a   : > { %v889_v36 = vsel %vm883_vm5, %v886_v9, %v888_v54  ;;  %v958_v53 = vshrl.u32 %v957_v27, 23  ;;  %vm737_vm10 = vcmp.lt.s32.totalorder %v736_v42, 2  ;;  %vm748_vm12 = vcmp.lt.s32.totalorder %v1458_v44, 0 }
 0x13b   : > { %vm1174_vm9 = vcmp.lt.s32.totalorder %v1173_v55, 0  ;;  %v908_v59 = vadd.s32 1, %v1934_v39  ;;  %v802_v60 = vadd.s32 %v1868_v10, %v1873_v13  ;;  %v832_v0 = vsub.s32 4, %v1908_v25 }
 0x13c   : > { %v817_v6 = vsel %vm1174_vm9, 0, %v1173_v55  ;;  %v1179_v61 = vadd.s32 4294967169, %v958_v53  ;;  %v905_v47 = vmul.u32 %v898_v35, %v889_v36  ;;  %vm907_vm11 = vc.u32 %v1940_v5, %v1933_v29 }
 0x13d   : > { %v818_v34 = vsub.s32 32, %v817_v6  ;;  %v822_v16 = vsub.s32 4294967266, %v817_v6  ;;  %v819_v51 = vshll.u32 %v1919_v18, %v817_v6  ;;  %v909_v12 = vsel %vm907_vm11, %v908_v59, %v1934_v39 }
 0x13e   : > { %vm741_vm13 = vcmp.eq.s32.totalorder %v736_v42, 2  ;;  %v910_v10 = vadd.s32 %v909_v12, %v905_v47  ;;  %v964_v13 = vadd.s32 1, %v1179_v61  ;;  %vm738_vm14 = vcmp.eq.s32.totalorder %v736_v42, 0 }
 0x13f   : > { %v1290_v14 = vpop.eup %1289  ;;  %v820_v52 = vshrl.u32 %v802_v60, %v818_v34  ;;  %v823_v50 = vadd.s32 127, %v822_v16  ;;  %v833_v33 = vsel %vm748_vm12, %v832_v0, %v1908_v25  ;;  %vm1959_vm0 = vcmp.le.f32.partialorder %v746_v41, 0.7853982 }
 0x140   : > { %v1292_v3 = vpop.eup %1291  ;;  %v742_v4 = vxor.u32 2147483648, %v1290_v14  ;;  %v911_v62 = vadd.s32 536870912, %v910_v10  ;;  %vm965_vm15 = vcmp.gt.s32.totalorder %v964_v13, 0  ;;  %v954_v24 = vand.u32 2147483647, %v1466_v49 }
 0x141   : > { %v739_v48 = vxor.u32 2147483648, %v1292_v3  ;;  %v821_v8 = vor.u32 %v820_v52, %v819_v51  ;;  %v824_v18 = vshll.u32 %v823_v50, 23  ;;  %v966_v56 = vsel %vm965_vm15, %v964_v13, 0 }
 0x142   : > { %v743_v2 = vsel %vm741_vm13, %v742_v4, %v1292_v3  ;;  %v1965_v20 = vshrl.u32 %v911_v62, 30  ;;  %v968_v25 = vand.u32 31, %v966_v56  ;;  %v835_v58 = vsel %vm1959_vm0, 0, %v833_v33 }
 0x143   : > { %v740_v7 = vsel %vm738_vm14, %v1290_v14, %v739_v48  ;;  %v825_v26 = vor.u32 4788187, %v824_v18  ;;  %v828_v32 = vcvt.s32.f32 %v821_v8  ;;  %v839_v35 = vadd.s32 3, %v835_v58 }
 0x144   : > { %v744_v45 = vsel %vm737_vm10, %v740_v7, %v743_v2  ;;  %v913_v41 = vshll.u32 %v1965_v20, 30  ;;  %v969_v40 = vsub.s32 32, %v968_v25  ;;  %v961_v38 = vand.u32 8388607, %v954_v24 }
 0x145   : > { %v745_v30 = vsel %vm734_vm7, nan, %v744_v45  ;;  %v826_v31 = vand.u32 2147483647, %v825_v26  ;;  %v971_v54 = vshll.u32 %v1370_v11, %v968_v25  ;;  %v974_v37 = vshll.u32 %v1371_v15, %v968_v25 }
 0x146   : > { %1062 = vst [vmem:[%s1748_s4 + $0x20] sm:$0xff] %v745_v30  ;;  %v1972_v42 = vsub.s32 %v910_v10, %v913_v41  ;;  %v972_v43 = vshrl.u32 %v1371_v15, %v969_v40  ;;  %v975_v1 = vshrl.u32 %v1372_v17, %v969_v40  ;;  %v978_v39 = vshrl.u32 %v1373_v19, %v969_v40 }
 0x147   : > { %v829_v57 = vmul.f32 %v828_v32, %v826_v31  ;;  %v977_v27 = vshll.u32 %v1372_v17, %v968_v25  ;;  %v981_v63 = vshrl.u32 %v1374_v21, %v969_v40  ;;  %v967_v53 = vshrl.u32 %v966_v56, 5 }
 0x148   : > { %v916_v55 = vsub.s32 0, %v1972_v42  ;;  %v973_v6 = vor.u32 %v972_v43, %v971_v54  ;;  %v980_v59 = vshll.u32 %v1373_v19, %v968_v25  ;;  %v976_v16 = vor.u32 %v975_v1, %v974_v37 }
 0x149   : > { %v830_v9 = vxor.u32 2147483648, %v829_v57  ;;  %v979_v61 = vor.u32 %v978_v39, %v977_v27  ;;  %v983_v17 = vshll.u32 %v1374_v21, %v968_v25  ;;  %v984_v14 = vshrl.u32 %v1375_v28, %v969_v40 }
 0x14a   : > { %v1176_v34 = vmin.u32 %v916_v55, %v1972_v42  ;;  %v982_v15 = vor.u32 %v981_v63, %v980_v59  ;;  %v840_v51 = vand.u32 3, %v839_v35  ;;  %v962_v47 = vor.u32 8388608, %v961_v38 }
 0x14b   : > { %v831_v36 = vsel %vm748_vm12, %v830_v9, %v829_v57  ;;  %v906_v19 = vadd.s32 %v1933_v29, %v1940_v5  ;;  %v970_v3 = vshrl.u32 %v1370_v11, %v969_v40  ;;  %v985_v4 = vor.u32 %v984_v14, %v983_v17 }
 0x14c   : > { %v834_v60 = vsel %vm1959_vm0, %v1458_v44, %v831_v36  ;;  %v918_v0 = vclz %v1176_v34  ;;  %vm986_vm1 = vcmp.lt.s32.totalorder %v967_v53, 1  ;;  %vm988_vm2 = vcmp.lt.s32.totalorder %v967_v53, 3 }
 0x14d   : > { %1293 = vcosq.f32 %v834_v60  ;;  %vm989_vm3 = vcmp.lt.s32.totalorder %v967_v53, 4  ;;  %v994_v50 = vsel %vm986_vm1, %v973_v6, %v976_v16  ;;  %v998_v28 = vsel %vm986_vm1, %v976_v16, %v979_v61 }
 0x14e   : > { %1295 = vsinq.f32 %v834_v60  ;;  %v1177_v52 = vadd.s32 4294967294, %v918_v0  ;;  %v991_v12 = vsel %vm989_vm3, %v979_v61, 2102212464  ;;  %v995_v21 = vsel %vm989_vm3, %v982_v15, 920167782 }
 0x14f   : > { %v999_v48 = vsel %vm989_vm3, %v985_v4, 1326507024  ;;  %vm987_vm5 = vcmp.lt.s32.totalorder %v967_v53, 2  ;;  %v996_v10 = vsel %vm988_vm2, %v979_v61, %v995_v21  ;;  %v1002_v2 = vshll.u32 %v962_v47, 8 }
 0x150   : > { %vm1178_vm4 = vcmp.lt.s32.totalorder %v1177_v52, 0  ;;  %v1000_v29 = vsel %vm988_vm2, %v982_v15, %v999_v48  ;;  %v997_v11 = vsel %vm987_vm5, %v994_v50, %v996_v10  ;;  %v990_v7 = vsel %vm986_vm1, %v970_v3, %v973_v6 }
 0x151   : > { %v921_v5 = vsel %vm1178_vm4, 0, %v1177_v52  ;;  %v1001_v13 = vsel %vm987_vm5, %v998_v28, %v1000_v29  ;;  %v992_v33 = vsel %vm988_vm2, %v976_v16, %v991_v12  ;;  %vm845_vm6 = vcmp.eq.s32.totalorder %v840_v51, 2 }
 0x152   : > { %v922_v8 = vsub.s32 32, %v921_v5  ;;  %v926_v18 = vsub.s32 4294967266, %v921_v5  ;;  %v2004_v62 = vmul.u32.u64.low %v1002_v2, %v1001_v13  ;;  %v2005_v45 = vmul.u32.u64.high %v1002_v2, %v1001_v13, %v2004_v62 }
 0x153   : > { %v2007_v22 = vmul.u32.u64.low %v1002_v2, %v997_v11  ;;  %v2008_v26 = vmul.u32.u64.high %v1002_v2, %v997_v11, %v2007_v22  ;;  %v923_v56 = vshll.u32 %v1972_v42, %v921_v5  ;;  %v993_v32 = vsel %vm987_vm5, %v990_v7, %v992_v33 }
 0x154   : > { %v924_v30 = vshrl.u32 %v906_v19, %v922_v8  ;;  %v927_v25 = vadd.s32 127, %v926_v18  ;;  %vm842_vm7 = vcmp.eq.s32.totalorder %v840_v51, 0  ;;  %v1009_v42 = vmul.u32 %v1002_v2, %v993_v32 }
 0x155   : > { %vm1011_vm8 = vc.u32 %v2005_v45, %v2007_v22  ;;  %v1012_v38 = vadd.s32 1, %v2008_v26  ;;  %vm838_vm9 = vweird.f32 %v1458_v44  ;;  %vm841_vm10 = vcmp.lt.s32.totalorder %v840_v51, 2 }
 0x156   : > { %v925_v40 = vor.u32 %v924_v30, %v923_v56  ;;  %v928_v57 = vshll.u32 %v927_v25, 23  ;;  %v936_v36 = vsub.s32 4, %v1965_v20  ;;  %vm852_vm12 = vcmp.lt.s32.totalorder %v1461_v46, 0 }
 0x157   : > { %v1294_v31 = vpop.eup %1293  ;;  %v1013_v1 = vsel %vm1011_vm8, %v1012_v38, %v2008_v26  ;;  %vm851_vm11 = vcmp.le.f32.partialorder %v850_v23, 0.7853982  ;;  %v1010_v12 = vadd.s32 %v2007_v22, %v2005_v45  ;;  %vm942_vm1 = vweird.f32 %v1461_v46 }
 0x158   : > { %v1296_v58 = vpop.eup %1295  ;;  %v846_v41 = vxor.u32 2147483648, %v1294_v31  ;;  %v929_v9 = vor.u32 4788187, %v928_v57  ;;  %v932_v37 = vcvt.s32.f32 %v925_v40  ;;  %v1014_v27 = vadd.s32 %v1013_v1, %v1009_v42 }
 0x159   : > { %v843_v35 = vxor.u32 2147483648, %v1296_v58  ;;  %v937_v44 = vsel %vm852_vm12, %v936_v36, %v1965_v20  ;;  %vm956_vm2 = vcmp.lt.s32.totalorder %v1466_v49, 0  ;;  %vm955_vm3 = vcmp.le.f32.partialorder %v954_v24, 0.7853982 }
 0x15a   : > { %v847_v43 = vsel %vm845_vm6, %v846_v41, %v1296_v58  ;;  %v930_v55 = vand.u32 2147483647, %v929_v9  ;;  %v1015_v6 = vadd.s32 536870912, %v1014_v27  ;;  %v939_v15 = vsel %vm851_vm11, 0, %v937_v44 }
 0x15b   : > { %v844_v54 = vsel %vm842_vm7, %v1294_v31, %v843_v35  ;;  %v943_v51 = vadd.s32 3, %v939_v15  ;;  %vm1046_vm8 = vweird.f32 %v1466_v49 }
 0x15c   : > { %v848_v39 = vsel %vm841_vm10, %v844_v54, %v847_v43  ;;  %v933_v53 = vmul.f32 %v932_v37, %v930_v55  ;;  %v1016_v60 = vshrl.u32 %v1015_v6, 30 }
 0x15d   : > { %v849_v63 = vsel %vm838_vm9, nan, %v848_v39  ;;  %v944_v19 = vand.u32 3, %v943_v51 }
 0x15e   : > { %1063 = vst [vmem:[%s1748_s4 + $0x28] sm:$0xff] %v849_v63  ;;  %v934_v59 = vxor.u32 2147483648, %v933_v53  ;;  %v1017_v16 = vshll.u32 %v1016_v60, 30  ;;  %v1040_v22 = vsub.s32 4, %v1016_v60 }
 0x15f   : > { %vm949_vm14 = vcmp.eq.s32.totalorder %v944_v19, 2  ;;  %vm945_vm15 = vcmp.lt.s32.totalorder %v944_v19, 2  ;;  %vm946_vm0 = vcmp.eq.s32.totalorder %v944_v19, 0 }
 0x160   : > { %v935_v34 = vsel %vm852_vm12, %v934_v59, %v933_v53  ;;  %v1018_v17 = vsub.s32 %v1014_v27, %v1017_v16 }
 0x161   : > { %v938_v61 = vsel %vm851_vm11, %v1461_v46, %v935_v34  ;;  %v1041_v46 = vsel %vm956_vm2, %v1040_v22, %v1016_v60 }
 0x162   : > { %1297 = vcosq.f32 %v938_v61  ;;  %v1020_v14 = vsub.s32 0, %v1018_v17  ;;  %v1043_v25 = vsel %vm955_vm3, 0, %v1041_v46 }
 0x163   : > { %1299 = vsinq.f32 %v938_v61  ;;  %v1047_v31 = vadd.s32 3, %v1043_v25 }
 0x164   : > { %v1180_v0 = vmin.u32 %v1020_v14, %v1018_v17 }
 0x165   : > { %v1048_v32 = vand.u32 3, %v1047_v31 }
 0x166   : > { %v1022_v47 = vclz %v1180_v0 }
 0x167   : > { %vm1053_vm4 = vcmp.eq.s32.totalorder %v1048_v32, 2  ;;  %vm1050_vm5 = vcmp.eq.s32.totalorder %v1048_v32, 0  ;;  %vm1049_vm6 = vcmp.lt.s32.totalorder %v1048_v32, 2 }
 0x168   : > { %v1181_v3 = vadd.s32 4294967294, %v1022_v47 }
 0x16a   : > { %vm1182_vm13 = vcmp.lt.s32.totalorder %v1181_v3, 0 }
 0x16b   : > { %v1025_v23 = vsel %vm1182_vm13, 0, %v1181_v3 }
 0x16c   : > { %v1298_v4 = vpop.eup %1297  ;;  %v1026_v21 = vsub.s32 32, %v1025_v23  ;;  %v1030_v28 = vsub.s32 4294967266, %v1025_v23  ;;  %v1027_v29 = vshll.u32 %v1018_v17, %v1025_v23 }
 0x16d   : > { %v1300_v20 = vpop.eup %1299  ;;  %v950_v52 = vxor.u32 2147483648, %v1298_v4 }
 0x16e   : > { %v947_v50 = vxor.u32 2147483648, %v1300_v20  ;;  %v1028_v5 = vshrl.u32 %v1010_v12, %v1026_v21  ;;  %v1031_v11 = vadd.s32 127, %v1030_v28 }
 0x16f   : > { %v951_v48 = vsel %vm949_vm14, %v950_v52, %v1300_v20 }
 0x170   : > { %v948_v10 = vsel %vm946_vm0, %v1298_v4, %v947_v50  ;;  %v1029_v8 = vor.u32 %v1028_v5, %v1027_v29  ;;  %v1032_v18 = vshll.u32 %v1031_v11, 23 }
 0x171   : > { %v952_v13 = vsel %vm945_vm15, %v948_v10, %v951_v48 }
 0x172   : > { %v953_v2 = vsel %vm942_vm1, nan, %v952_v13  ;;  %v1033_v7 = vor.u32 4788187, %v1032_v18  ;;  %v1036_v62 = vcvt.s32.f32 %v1029_v8 }
 0x173   : > { %1064 = vst [vmem:[%s1748_s4 + $0x30] sm:$0xff] %v953_v2 }
 0x174   : > { %v1034_v33 = vand.u32 2147483647, %v1033_v7 }
 0x176   : > { %v1037_v45 = vmul.f32 %v1036_v62, %v1034_v33 }
 0x178   : > { %v1038_v26 = vxor.u32 2147483648, %v1037_v45 }
 0x17a   : > { %v1039_v56 = vsel %vm956_vm2, %v1038_v26, %v1037_v45 }
 0x17b   : > { %v1042_v30 = vsel %vm955_vm3, %v1466_v49, %v1039_v56 }
 0x17c   : > { %1301 = vcosq.f32 %v1042_v30 }
 0x17d   : > { %1303 = vsinq.f32 %v1042_v30 }
 0x186   : > { %v1302_v58 = vpop.eup %1301 }
 0x187   : > { %v1304_v41 = vpop.eup %1303  ;;  %v1054_v40 = vxor.u32 2147483648, %v1302_v58 }
 0x188   : > { %v1051_v57 = vxor.u32 2147483648, %v1304_v41 }
 0x189   : > { %v1055_v24 = vsel %vm1053_vm4, %v1054_v40, %v1304_v41 }
 0x18a   : > { %v1052_v35 = vsel %vm1050_vm5, %v1302_v58, %v1051_v57 }
 0x18b   : > { %v1056_v38 = vsel %vm1049_vm6, %v1052_v35, %v1055_v24 }
 0x18c   : > { %v1057_v43 = vsel %vm1046_vm8, nan, %v1056_v38 }
 0x18d   : > { %1065 = vst [vmem:[%s1748_s4 + $0x38] sm:$0xff] %v1057_v43 }
 0x18e   : > { %1318 = shalt.err (!%p1315_p3)
}
 0x18f   : > { %s1319_s23 = scalar_lea.hbm %s2035_s14, 1024  ;;  %s1323_s26 = scalar_lea.hbm %s2086_s2, 2048 }
 0x190   : > { %p1320_p4 = scmp.ne.s32.totalorder %s2035_s14, %s1319_s23  ;;  %p1324_p9 = scmp.lt.u32.totalorder %s2035_s14, %s2086_s2 }
 0x191   : > { %p1325_p10 = scmp.lt.u32.totalorder %s1323_s26, %s1319_s23  ;;  %p1327_p12 = scmp.lt.u32.totalorder %s1319_s23, %s2035_s14 }
 0x192   : > { %p1321_p7 = pnand %p1320_p4, %p1432_p5 }
 0x193   : > { %p1326_p11 = por %p1325_p10, %p1324_p9 }
 0x194   : > { %p1322_p8 = pneg %p1321_p7 }
 0x195   : > { %p1328_p13 = por %p1327_p12, %p1326_p11 }
 0x197   : > { %p1329_p0 = pnand %p1328_p13, %p1322_p8 }
 0x199   : > { %1332 = shalt.err (!%p1329_p0)
}
 0x19a   : > { %s1377_s29 = smov 256   ;;  %s1378_s30 = smov 16  }
 0x19b   : > { %1223 = dma.vmem_to_hbm [thread:$0]  (%p1432_p5), %s2037_s6, 1024, %s2035_s14, %s2043_s13, %s1377_s29, %s1377_s29, %s1378_s30  }
 0x19c PF: > { %p1229_p1 = scmp.ge.s32.totalorder %s1367_s12, 2  ;;  %s1096_s3 = sand.u32 1, %s1355_s9  }
 0x19d   : > { %s1097_s4 = scalar_lea.sflag [#allocation3], %s1096_s3 }
 0x19e   : > { %p1226_p2 = pnand %p1229_p1, %p1436_p6 }
 0x1a0   : > { %1350 = dma.done.wait (!%p1226_p2), %s1097_s4, 1024  }
 0x1a1   : > { %1352 = vsyncadd (!%p1226_p2), %s1097_s4, 4294966272  ;;  %p12_p3 = scmp.ge.s32.totalorder %s1419_s15, 4   ;;  %s2101_s9 = smov %s1359_s10 }
 0x1a2   : > { %s2102_s10 = smov %s1363_s11  ;;  %s2103_s11 = smov %s1430_s18 }
 0x1a3   : > { %s2104_s12 = smov %s1419_s15  ;;  %14 = sbr.rel (!%p12_p3) target bundleno = 3 (0x3), region = 64 }
 0x1aa   :  { %1102 = vsyncpa [#allocation3], 1 }
 0x1ab   :  { %1104 = vsyncpa [#allocation3 + $0x1], 1 }

</bundles_post_ra>
